<compile_context>
chip_gen: v5e
topology: v5e:2x2
jax: 0.10.0
libtpu: 0.0.40
codegen_flags: <defaults>
</compile_context>

<pallas_src>
import functools

import jax
import jax.numpy as jnp
from jax import lax
from jax.experimental import pallas as pl
from jax.experimental.pallas import tpu as pltpu

# dot_general dims: (m, k) x (n, k) -> (m, n)   (transposed-RHS MXU matmul)
_NT_DIMS = (((1,), (1,)), ((), ()))


def _vmem_limit_bytes():
    """~75% of per-core VMEM, capped at 96 MiB (v5e/v6e ~96 MiB, v7x ~48 MiB)."""
    try:
        cap = int(pltpu.get_tpu_info().vmem_capacity_bytes)
    except Exception:  # conservative fallback, safe on every generation
        cap = 64 * 1024 * 1024
    return min(96 * 1024 * 1024, (cap * 3) // 4)


def _pick_row_block(ho, wo, kc, cout, kh_taps, budget_bytes):
    """Largest divisor of Ho whose (double-buffered) tile fits the VMEM budget.

    rows = rb*wo must be a multiple of 128 whenever the height is actually
    tiled (lane-dim constraint of the (1, Cout, rows) blocks).
    """
    for rb in range(ho, 0, -1):
        if ho % rb:
            continue
        rows = rb * wo
        if (ho // rb) > 1 and rows % 128:
            continue
        halo_rows = rb + kh_taps - 1
        # phase 1: 2x (haloed bf16 input + bf16 out) + f32 acc in vregs/spill
        ph1 = 2 * (halo_rows * wo * kc * 2 + cout * rows * 2) + cout * rows * 4
        # phase 2: 2x (bf16 in + f32 out)
        ph2 = 2 * (cout * rows * 2 + cout * rows * 4)
        if max(ph1, ph2) <= budget_bytes:
            return rb
    # TODO(synk): images too large even for a single row-tile would need an
    # additional width-tiling axis.
    return ho


def _conv_stats_kernel(x_ref, w_ref, y_ref, psum_ref, psumsq_ref, *, wo,
                       kh_taps):
    """Phase 1: conv tile as KH MXU matmuls (K = KW*Cin), channels-major,
    plus per-tile per-channel BN partial statistics.

    x_ref:      (1, 1, (rb+KH-1)*Wo, KW*Cin) bf16 haloed, flattened row window.
    w_ref:      (KH, Cout, KW*Cin)           bf16 weights (channels-major).
    y_ref:      (1, Cout, rb*Wo)             bf16 pre-BN conv tile (lane-dense).
    psum_ref:   (1, 1, Cout, 1) f32 per-tile per-channel sum.
    psumsq_ref: (1, 1, Cout, 1) f32 per-tile per-channel sum of squares.
    """
    cout = y_ref.shape[1]
    rows = y_ref.shape[2]

    # Each tap is a static sublane-axis slice feeding the MXU directly; the
    # transposed-RHS dimension numbers give the result channels-major.
    acc = lax.dot_general(w_ref[0], x_ref[0, 0, pl.ds(0, rows), :], _NT_DIMS,
                          preferred_element_type=jnp.float32)
    for kh in range(1, kh_taps):
        acc = acc + lax.dot_general(w_ref[kh],
                                    x_ref[0, 0, pl.ds(kh * wo, rows), :],
                                    _NT_DIMS,
                                    preferred_element_type=jnp.float32)

    # One-pass BN partial statistics, reduced in f32 before the bf16 downcast
    # (summed across tiles in the wrapper; var = E[x^2] - mean^2).
    psum_ref[...] = jnp.sum(acc, axis=1, keepdims=True).reshape(1, 1, cout, 1)
    psumsq_ref[...] = jnp.sum(acc * acc, axis=1,
                              keepdims=True).reshape(1, 1, cout, 1)
    # Lane-dense (channels-major) bf16 intermediate.
    y_ref[...] = acc.astype(jnp.bfloat16).reshape(1, cout, rows)


def _bn_relu_kernel(y_ref, scale_ref, shift_ref, o_ref):
    """Phase 2: per-channel affine (folded BN) + ReLU; f32 epilogue."""
    y = y_ref[...].astype(jnp.float32)                    # (1, Cout, rows)
    o_ref[...] = jnp.maximum(y * scale_ref[...] + shift_ref[...], 0.0)


def basic_conv(x_nchw, weight_oihw, gamma, beta, *, padding=1, eps=1e-5,
               row_block=None):
    """BasicConv forward. x_nchw: (N, Cin, H, W); weight: (Cout, Cin, KH, KW)."""
    n, cin, h, w = x_nchw.shape
    cout, cin_w, kh_taps, kw_taps = weight_oihw.shape
    assert cin == cin_w

    ho = h + 2 * padding - (kh_taps - 1)
    wo = w + 2 * padding - (kw_taps - 1)
    kc = kw_taps * cin

    vmem_limit = _vmem_limit_bytes()
    if row_block is None:
        row_block = _pick_row_block(ho, wo, kc, cout, kh_taps,
                                    (vmem_limit * 2) // 3)
    assert ho % row_block == 0, "row_block must divide the output height"
    num_t = ho // row_block
    rows = row_block * wo
    assert num_t == 1 or rows % 128 == 0, (
        "row_block*Wo must be a multiple of 128 when the height is tiled")
    halo_rows = row_block + kh_taps - 1

    # ---- layout glue (fused XLA pre-pass): NCHW -> NHWC, zero-pad, fold the
    # KW taps into the channel axis, window the H axis per row-tile with a
    # KH-1 halo, and flatten (rows, W) so in-kernel tap loads are plain
    # sublane slices. Cast to bf16 before the (largest) gather.
    x_nhwc = jnp.transpose(x_nchw, (0, 2, 3, 1)).astype(jnp.float32)
    x_pad = jnp.pad(
        x_nhwc, ((0, 0), (padding, padding), (padding, padding), (0, 0)))
    x_col = jnp.concatenate(
        [x_pad[:, :, kw:kw + wo, :] for kw in range(kw_taps)],
        axis=-1).astype(jnp.bfloat16)                  # (N, Hp, Wo, KW*Cin)
    row_idx = (jnp.arange(num_t, dtype=jnp.int32)[:, None] * row_block
               + jnp.arange(halo_rows, dtype=jnp.int32)[None, :])
    x_win = x_col[:, row_idx].reshape(n, num_t, halo_rows * wo, kc)
    # TODO(synk): for channel-heavy layers the KW fold + halo window should be
    # done in-kernel from an (N, Hp, Wp, Cin) layout to avoid this HBM copy.

    # Weights: (Cout, Cin, KH, KW) -> (KH, Cout, KW*Cin), matching x_win lanes.
    w2 = jnp.transpose(weight_oihw, (2, 0, 3, 1)).reshape(
        kh_taps, cout, kc).astype(jnp.bfloat16)

    # ---- phase 1: tiled conv + partial BN statistics -------------------------
    kernel1 = functools.partial(_conv_stats_kernel, wo=wo, kh_taps=kh_taps)
    y_conv, psum, psumsq = pl.pallas_call(
        kernel1,
        out_shape=(
            jax.ShapeDtypeStruct((n, cout, ho * wo), jnp.bfloat16),
            jax.ShapeDtypeStruct((n, num_t, cout, 1), jnp.float32),
            jax.ShapeDtypeStruct((n, num_t, cout, 1), jnp.float32),
        ),
        grid_spec=pltpu.PrefetchScalarGridSpec(
            num_scalar_prefetch=0,
            grid=(n, num_t),
            in_specs=[
                pl.BlockSpec((1, 1, halo_rows * wo, kc),
                             lambda ni, ti: (ni, ti, 0, 0)),
                pl.BlockSpec((kh_taps, cout, kc), lambda ni, ti: (0, 0, 0)),
            ],
            out_specs=[
                pl.BlockSpec((1, cout, rows), lambda ni, ti: (ni, 0, ti)),
                pl.BlockSpec((1, 1, cout, 1), lambda ni, ti: (ni, ti, 0, 0)),
                pl.BlockSpec((1, 1, cout, 1), lambda ni, ti: (ni, ti, 0, 0)),
            ],
        ),
        compiler_params=pltpu.CompilerParams(
            dimension_semantics=("parallel", "parallel"),
            vmem_limit_bytes=vmem_limit,
        ),
    )(x_win, w2)

    # ---- tiny per-channel reduction + BN fold (plain JAX, O(Cout)) ----------
    count = jnp.float32(n * ho * wo)
    s1 = jnp.sum(psum, axis=(0, 1, 3))                   # (Cout,)
    s2 = jnp.sum(psumsq, axis=(0, 1, 3))                 # (Cout,)
    mean = s1 / count
    # Biased (training-mode) variance; clamp the one-pass cancellation.
    var = jnp.maximum(s2 / count - mean * mean, 0.0)
    inv_std = lax.rsqrt(var + eps)
    scale_c = gamma.astype(jnp.float32) * inv_std
    shift_c = beta.astype(jnp.float32) - mean * scale_c
    scale = scale_c.reshape(1, cout, 1)
    shift = shift_c.reshape(1, cout, 1)

    # ---- phase 2: tiled normalize (folded affine) + ReLU ---------------------
    out_flat = pl.pallas_call(
        _bn_relu_kernel,
        out_shape=jax.ShapeDtypeStruct((n, cout, ho * wo), jnp.float32),
        grid_spec=pltpu.PrefetchScalarGridSpec(
            num_scalar_prefetch=0,
            grid=(n, num_t),
            in_specs=[
                pl.BlockSpec((1, cout, rows), lambda ni, ti: (ni, 0, ti)),
                pl.BlockSpec((1, cout, 1), lambda ni, ti: (0, 0, 0)),
                pl.BlockSpec((1, cout, 1), lambda ni, ti: (0, 0, 0)),
            ],
            out_specs=pl.BlockSpec((1, cout, rows), lambda ni, ti: (ni, 0, ti)),
        ),
        compiler_params=pltpu.CompilerParams(
            dimension_semantics=("parallel", "parallel"),
            vmem_limit_bytes=vmem_limit,
        ),
    )(y_conv, scale, shift)

    # Channels-major flat layout is already NCHW; this reshape is free.
    return out_flat.reshape(n, cout, ho, wo)


def _reference(x_nchw, weight_oihw, gamma, beta, *, padding=1, eps=1e-5):
    """Plain-JAX reference: conv (no bias) + train-mode BN + ReLU.

    Inputs and the conv intermediate are rounded through bf16 to mirror the
    kernel's intentional bf16 MXU inputs / bf16 intermediate (stats stay f32),
    so the comparison isolates kernel bugs.
    """
    xb = x_nchw.astype(jnp.bfloat16).astype(jnp.float32)
    wb = weight_oihw.astype(jnp.bfloat16).astype(jnp.float32)
    conv = lax.conv_general_dilated(
        xb, wb, window_strides=(1, 1),
        padding=[(padding, padding), (padding, padding)],
        dimension_numbers=("NCHW", "OIHW", "NCHW"))
    mean = jnp.mean(conv, axis=(0, 2, 3), keepdims=True)
    var = jnp.mean((conv - mean) ** 2, axis=(0, 2, 3), keepdims=True)
    conv_b = conv.astype(jnp.bfloat16).astype(jnp.float32)
    y = (conv_b - mean) * lax.rsqrt(var + eps)
    y = y * gamma.reshape(1, -1, 1, 1) + beta.reshape(1, -1, 1, 1)
    return jnp.maximum(y, 0.0)


if __name__ == "__main__":
    # BasicConv(in_planes=4, out_planes=8, kernel_size=3, padding=1)
    N, Cin, H, W = 2, 4, 16, 16
    Cout, KH, KW = 8, 3, 3

    key = jax.random.PRNGKey(0)
    kx, kw, kg, kb = jax.random.split(key, 4)

    x = jax.random.normal(kx, (N, Cin, H, W), dtype=jnp.float32)
    weight = 0.1 * jax.random.normal(kw, (Cout, Cin, KH, KW), dtype=jnp.float32)
    gamma = 1.0 + 0.1 * jax.random.normal(kg, (Cout,), dtype=jnp.float32)
    beta = 0.1 * jax.random.normal(kb, (Cout,), dtype=jnp.float32)

    # row_block=8 -> grid (N=2, row_tiles=2): exercises the haloed tiled path.
    conv_fn = jax.jit(functools.partial(basic_conv, padding=1, row_block=8))
    out = conv_fn(x, weight, gamma, beta)
    out = jax.block_until_ready(out)

    ref = _reference(x, weight, gamma, beta, padding=1)
    assert out.shape == (N, Cout, H, W)
    assert jnp.allclose(out, ref, atol=2e-2, rtol=2e-2), "mismatch vs reference"

    print("KERNEL_OK")
</pallas_src>

<mosaic_0001>
module attributes {stable_mosaic.version = 11 : i64} {
  func.func @_conv_stats_kernel(%arg0: i32, %arg1: i32, %arg2: memref<1x1x160x12xbf16, #tpu.memory_space<vmem>>, %arg3: memref<3x8x12xbf16, #tpu.memory_space<vmem>>, %arg4: memref<1x8x128xbf16, #tpu.memory_space<vmem>>, %arg5: memref<1x1x8x1xf32, #tpu.memory_space<vmem>>, %arg6: memref<1x1x8x1xf32, #tpu.memory_space<vmem>>) attributes {dimension_semantics = [#tpu.dimension_semantics<parallel>, #tpu.dimension_semantics<parallel>], iteration_bounds = array<i64: 2, 2>, scalar_prefetch = 0 : i64, scratch_operands = 0 : i64, tpu.core_type = #tpu.core_type<tc>, window_params = [{transform_indices = @transform_0, window_bounds = array<i64: 1, 1, 160, 12>}, {pipeline_mode = #tpu.pipeline_mode<synchronous>, transform_indices = @transform_1, window_bounds = array<i64: 3, 8, 12>}, {transform_indices = @transform_2, window_bounds = array<i64: 1, 8, 128>}, {transform_indices = @transform_3, window_bounds = array<i64: 1, 1, 8, 1>}, {transform_indices = @transform_4, window_bounds = array<i64: 1, 1, 8, 1>}]} {
    %c0 = arith.constant 0 : index
    %c0_0 = arith.constant 0 : index
    %c0_1 = arith.constant 0 : index
    %0 = vector.load %arg3[%c0, %c0_0, %c0_1] : memref<3x8x12xbf16, #tpu.memory_space<vmem>>, vector<1x8x12xbf16>
    %1 = vector.shape_cast %0 : vector<1x8x12xbf16> to vector<8x12xbf16>
    %c0_2 = arith.constant 0 : index
    %c0_3 = arith.constant 0 : index
    %c0_4 = arith.constant 0 : index
    %c0_5 = arith.constant 0 : index
    %2 = vector.load %arg2[%c0_2, %c0_3, %c0_4, %c0_5] : memref<1x1x160x12xbf16, #tpu.memory_space<vmem>>, vector<1x1x128x12xbf16>
    %3 = vector.shape_cast %2 : vector<1x1x128x12xbf16> to vector<128x12xbf16>
    %cst = arith.constant dense<0.000000e+00> : vector<8x128xf32>
    %4 = tpu.matmul %1, %3, %cst {dimension_numbers = #tpu.dot_dimension_numbers<[1], [1], [0], [0], [0, 0, 1, 0], [], []>} : vector<8x12xbf16>, vector<128x12xbf16>, vector<8x128xf32> -> vector<8x128xf32>
    %c1 = arith.constant 1 : index
    %c0_6 = arith.constant 0 : index
    %c0_7 = arith.constant 0 : index
    %5 = vector.load %arg3[%c1, %c0_6, %c0_7] : memref<3x8x12xbf16, #tpu.memory_space<vmem>>, vector<1x8x12xbf16>
    %6 = vector.shape_cast %5 : vector<1x8x12xbf16> to vector<8x12xbf16>
    %c0_8 = arith.constant 0 : index
    %c0_9 = arith.constant 0 : index
    %c16 = arith.constant 16 : index
    %c0_10 = arith.constant 0 : index
    %7 = vector.load %arg2[%c0_8, %c0_9, %c16, %c0_10] : memref<1x1x160x12xbf16, #tpu.memory_space<vmem>>, vector<1x1x128x12xbf16>
    %8 = vector.shape_cast %7 : vector<1x1x128x12xbf16> to vector<128x12xbf16>
    %cst_11 = arith.constant dense<0.000000e+00> : vector<8x128xf32>
    %9 = tpu.matmul %6, %8, %cst_11 {dimension_numbers = #tpu.dot_dimension_numbers<[1], [1], [0], [0], [0, 0, 1, 0], [], []>} : vector<8x12xbf16>, vector<128x12xbf16>, vector<8x128xf32> -> vector<8x128xf32>
    %10 = arith.addf %4, %9 : vector<8x128xf32>
    %c2 = arith.constant 2 : index
    %c0_12 = arith.constant 0 : index
    %c0_13 = arith.constant 0 : index
    %11 = vector.load %arg3[%c2, %c0_12, %c0_13] : memref<3x8x12xbf16, #tpu.memory_space<vmem>>, vector<1x8x12xbf16>
    %12 = vector.shape_cast %11 : vector<1x8x12xbf16> to vector<8x12xbf16>
    %c0_14 = arith.constant 0 : index
    %c0_15 = arith.constant 0 : index
    %c32 = arith.constant 32 : index
    %c0_16 = arith.constant 0 : index
    %13 = vector.load %arg2[%c0_14, %c0_15, %c32, %c0_16] : memref<1x1x160x12xbf16, #tpu.memory_space<vmem>>, vector<1x1x128x12xbf16>
    %14 = vector.shape_cast %13 : vector<1x1x128x12xbf16> to vector<128x12xbf16>
    %cst_17 = arith.constant dense<0.000000e+00> : vector<8x128xf32>
    %15 = tpu.matmul %12, %14, %cst_17 {dimension_numbers = #tpu.dot_dimension_numbers<[1], [1], [0], [0], [0, 0, 1, 0], [], []>} : vector<8x12xbf16>, vector<128x12xbf16>, vector<8x128xf32> -> vector<8x128xf32>
    %16 = arith.addf %10, %15 : vector<8x128xf32>
    %cst_18 = arith.constant dense<0.000000e+00> : vector<8xf32>
    %17 = vector.multi_reduction <add>, %16, %cst_18 [1] : vector<8x128xf32> to vector<8xf32>
    %18 = vector.shape_cast %17 : vector<8xf32> to vector<8x1xf32>
    %19 = vector.shape_cast %18 : vector<8x1xf32> to vector<1x1x8x1xf32>
    %c0_19 = arith.constant 0 : index
    %c0_20 = arith.constant 0 : index
    %c0_21 = arith.constant 0 : index
    %c0_22 = arith.constant 0 : index
    %20 = vector.load %arg5[%c0_19, %c0_20, %c0_21, %c0_22] : memref<1x1x8x1xf32, #tpu.memory_space<vmem>>, vector<1x1x8x1xf32>
    tpu.vector_store %arg5[%c0_19, %c0_20, %c0_21, %c0_22], %19 {strides = array<i32>} : memref<1x1x8x1xf32, #tpu.memory_space<vmem>>, vector<1x1x8x1xf32>,
    %21 = arith.mulf %16, %16 : vector<8x128xf32>
    %cst_23 = arith.constant dense<0.000000e+00> : vector<8xf32>
    %22 = vector.multi_reduction <add>, %21, %cst_23 [1] : vector<8x128xf32> to vector<8xf32>
    %23 = vector.shape_cast %22 : vector<8xf32> to vector<8x1xf32>
    %24 = vector.shape_cast %23 : vector<8x1xf32> to vector<1x1x8x1xf32>
    %c0_24 = arith.constant 0 : index
    %c0_25 = arith.constant 0 : index
    %c0_26 = arith.constant 0 : index
    %c0_27 = arith.constant 0 : index
    %25 = vector.load %arg6[%c0_24, %c0_25, %c0_26, %c0_27] : memref<1x1x8x1xf32, #tpu.memory_space<vmem>>, vector<1x1x8x1xf32>
    tpu.vector_store %arg6[%c0_24, %c0_25, %c0_26, %c0_27], %24 {strides = array<i32>} : memref<1x1x8x1xf32, #tpu.memory_space<vmem>>, vector<1x1x8x1xf32>,
    %26 = arith.truncf %16 : vector<8x128xf32> to vector<8x128xbf16>
    %27 = vector.shape_cast %26 : vector<8x128xbf16> to vector<1x8x128xbf16>
    %c0_28 = arith.constant 0 : index
    %c0_29 = arith.constant 0 : index
    %c0_30 = arith.constant 0 : index
    %28 = vector.load %arg4[%c0_28, %c0_29, %c0_30] : memref<1x8x128xbf16, #tpu.memory_space<vmem>>, vector<1x8x128xbf16>
    tpu.vector_store %arg4[%c0_28, %c0_29, %c0_30], %27 {strides = array<i32>} : memref<1x8x128xbf16, #tpu.memory_space<vmem>>, vector<1x8x128xbf16>,
    return
  }
  func.func @transform_0(%arg0: i32, %arg1: i32) -> (i32, i32, i32, i32) {
    %c0_i32 = arith.constant 0 : i32
    %c0_i32_0 = arith.constant 0 : i32
    %c0_i32_1 = arith.constant 0 : i32
    return %arg0, %arg1, %c0_i32, %c0_i32_0 : i32, i32, i32, i32
  }
  func.func @transform_1(%arg0: i32, %arg1: i32) -> (i32, i32, i32) {
    %c0_i32 = arith.constant 0 : i32
    %c0_i32_0 = arith.constant 0 : i32
    %c0_i32_1 = arith.constant 0 : i32
    %c0_i32_2 = arith.constant 0 : i32
    return %c0_i32, %c0_i32_0, %c0_i32_1 : i32, i32, i32
  }
  func.func @transform_2(%arg0: i32, %arg1: i32) -> (i32, i32, i32) {
    %c0_i32 = arith.constant 0 : i32
    %c0_i32_0 = arith.constant 0 : i32
    return %arg0, %c0_i32, %arg1 : i32, i32, i32
  }
  func.func @transform_3(%arg0: i32, %arg1: i32) -> (i32, i32, i32, i32) {
    %c0_i32 = arith.constant 0 : i32
    %c0_i32_0 = arith.constant 0 : i32
    %c0_i32_1 = arith.constant 0 : i32
    return %arg0, %arg1, %c0_i32, %c0_i32_0 : i32, i32, i32, i32
  }
  func.func @transform_4(%arg0: i32, %arg1: i32) -> (i32, i32, i32, i32) {
    %c0_i32 = arith.constant 0 : i32
    %c0_i32_0 = arith.constant 0 : i32
    %c0_i32_1 = arith.constant 0 : i32
    return %arg0, %arg1, %c0_i32, %c0_i32_0 : i32, i32, i32, i32
  }
}

module attributes {stable_mosaic.version = 11 : i64} {
  func.func @_bn_relu_kernel(%arg0: i32, %arg1: i32, %arg2: memref<1x8x128xbf16, #tpu.memory_space<vmem>>, %arg3: memref<1x8x1xf32, #tpu.memory_space<vmem>>, %arg4: memref<1x8x1xf32, #tpu.memory_space<vmem>>, %arg5: memref<1x8x128xf32, #tpu.memory_space<vmem>>) attributes {dimension_semantics = [#tpu.dimension_semantics<parallel>, #tpu.dimension_semantics<parallel>], iteration_bounds = array<i64: 2, 2>, scalar_prefetch = 0 : i64, scratch_operands = 0 : i64, tpu.core_type = #tpu.core_type<tc>, window_params = [{transform_indices = @transform_0, window_bounds = array<i64: 1, 8, 128>}, {pipeline_mode = #tpu.pipeline_mode<synchronous>, transform_indices = @transform_1, window_bounds = array<i64: 1, 8, 1>}, {pipeline_mode = #tpu.pipeline_mode<synchronous>, transform_indices = @transform_2, window_bounds = array<i64: 1, 8, 1>}, {transform_indices = @transform_3, window_bounds = array<i64: 1, 8, 128>}]} {
    %c0 = arith.constant 0 : index
    %c0_0 = arith.constant 0 : index
    %c0_1 = arith.constant 0 : index
    %0 = vector.load %arg2[%c0, %c0_0, %c0_1] : memref<1x8x128xbf16, #tpu.memory_space<vmem>>, vector<1x8x128xbf16>
    %1 = arith.extf %0 : vector<1x8x128xbf16> to vector<1x8x128xf32>
    %c0_2 = arith.constant 0 : index
    %c0_3 = arith.constant 0 : index
    %c0_4 = arith.constant 0 : index
    %2 = vector.load %arg3[%c0_2, %c0_3, %c0_4] : memref<1x8x1xf32, #tpu.memory_space<vmem>>, vector<1x8x1xf32>
    %3 = vector.broadcast %2 : vector<1x8x1xf32> to vector<1x8x128xf32>
    %4 = arith.mulf %1, %3 : vector<1x8x128xf32>
    %c0_5 = arith.constant 0 : index
    %c0_6 = arith.constant 0 : index
    %c0_7 = arith.constant 0 : index
    %5 = vector.load %arg4[%c0_5, %c0_6, %c0_7] : memref<1x8x1xf32, #tpu.memory_space<vmem>>, vector<1x8x1xf32>
    %6 = vector.broadcast %5 : vector<1x8x1xf32> to vector<1x8x128xf32>
    %7 = arith.addf %4, %6 : vector<1x8x128xf32>
    %cst = arith.constant 0.000000e+00 : f32
    %8 = vector.broadcast %cst : f32 to vector<1x8x128xf32>
    %9 = arith.maximumf %7, %8 : vector<1x8x128xf32>
    %c0_8 = arith.constant 0 : index
    %c0_9 = arith.constant 0 : index
    %c0_10 = arith.constant 0 : index
    %10 = vector.load %arg5[%c0_8, %c0_9, %c0_10] : memref<1x8x128xf32, #tpu.memory_space<vmem>>, vector<1x8x128xf32>
    tpu.vector_store %arg5[%c0_8, %c0_9, %c0_10], %9 {strides = array<i32>} : memref<1x8x128xf32, #tpu.memory_space<vmem>>, vector<1x8x128xf32>,
    return
  }
  func.func @transform_0(%arg0: i32, %arg1: i32) -> (i32, i32, i32) {
    %c0_i32 = arith.constant 0 : i32
    %c0_i32_0 = arith.constant 0 : i32
    return %arg0, %c0_i32, %arg1 : i32, i32, i32
  }
  func.func @transform_1(%arg0: i32, %arg1: i32) -> (i32, i32, i32) {
    %c0_i32 = arith.constant 0 : i32
    %c0_i32_0 = arith.constant 0 : i32
    %c0_i32_1 = arith.constant 0 : i32
    %c0_i32_2 = arith.constant 0 : i32
    return %c0_i32, %c0_i32_0, %c0_i32_1 : i32, i32, i32
  }
  func.func @transform_2(%arg0: i32, %arg1: i32) -> (i32, i32, i32) {
    %c0_i32 = arith.constant 0 : i32
    %c0_i32_0 = arith.constant 0 : i32
    %c0_i32_1 = arith.constant 0 : i32
    %c0_i32_2 = arith.constant 0 : i32
    return %c0_i32, %c0_i32_0, %c0_i32_1 : i32, i32, i32
  }
  func.func @transform_3(%arg0: i32, %arg1: i32) -> (i32, i32, i32) {
    %c0_i32 = arith.constant 0 : i32
    %c0_i32_0 = arith.constant 0 : i32
    return %arg0, %c0_i32, %arg1 : i32, i32, i32
  }
}

</mosaic_0001>

<bundles_post_ra>
// kernel: basic_conv.3
= control target key start
LH: loop header
LB: loop body
LE: loop exit
PB: predicated region body
PF: predicated region fallthrough
CT: control target
= control target key end

     0   :  { %s420_s12 = smov 0   ;;  %s422_s13 = smov 0   ;;  %s477_s0 = inlined_call_operand.vmem [shape: bf16[2,8,256], index: 0, kind: input, shape index: {}]   ;;  %s478_s1 = inlined_call_operand.vmem [shape: f32[1,8,1], index: 1, kind: input, shape index: {}]   ;;  %s479_s2 = inlined_call_operand.vmem [shape: f32[1,8,1], index: 2, kind: input, shape index: {}]   ;;  %s480_s3 = inlined_call_operand.vmem [shape: f32[2,8,256], index: 3, kind: output, shape index: {}]  }
   0x1   :  { %s424_s14 = smov 0   ;;  %s426_s15 = smov 0  }
   0x2   :  { %s428_s16 = smov 0  }
   0x3 LB: > { %s22_s17 = sadd.s32 1, %s389_s14  ;;  %s25_s18 = sadd.s32 1, %s393_s15  ;;  %s397_s16 = sphi %s428_s16, %s13_s16   ;;  %s393_s15 = sphi %s426_s15, %s484_s15   ;;  %s389_s14 = sphi %s424_s14, %s483_s14   ;;  %s385_s13 = sphi %s422_s13, %s482_s13   ;;  %s381_s12 = sphi %s420_s12, %s481_s12  }
   0x4   : > { %p23_p0 = scmp.ge.s32.totalorder %s22_s17, 2  ;;  %p310_p1 = scmp.ge.s32.totalorder %s397_s16, 1 }
   0x5   : > { %p156_p2 = scmp.lt.s32.totalorder %s397_s16, 5 }
   0x6   : > { %s486_s17 = smov (%p23_p0, %s22_s17), 0  ;;  %s488_s18 = smov (!%p23_p0, %s25_s18), %s393_s15 }
   0x7   : > { %p157_p3 = pnand %p310_p1, %p156_p2  ;;  %p27_p4 = scmp.ge.s32.totalorder %s488_s18, 2 }
   0x8   : > { %p186_p5 = scmp.lt.s32.totalorder (!%p157_p3), %s385_s13, 1  ;;  %p188_p6 = scmp.lt.s32.totalorder (!%p157_p3), %s381_s12, 1 }
   0x9   : > { %s490_s18 = smov (%p27_p4, %s488_s18), 0  ;;  %160 = sbr.rel (%p157_p3) target bundleno = 144 (0x90), region = 32 }
   0xe   : > { %v204_v0 = vld [vmem:[%s478_s1] sm:$0xff]  ;;  %v399_v1 = vmov 0   ;;  %s492_s13 = smov (!%p186_p5, %s385_s13), 1  ;;  %s494_s12 = smov (!%p188_p6, %s381_s12), 1 }
   0xf   : > { %358 = vset.pattern.permute.xlu0 %v399_v1  ;;  %v211_v2 = vld [vmem:[%s479_s2] sm:$0xff]  ;;  %s311_s23 = sshll.u32 %s492_s13, 1 }
  0x10   : > { %207 = vperm.xlu0 %358, %v204_v0   ;;  %s191_s24 = sadd.s32 %s311_s23, %s494_s12 }
  0x11   : > { %s312_s25 = sshll.u32 %s191_s24, 2  ;;  %s314_s29 = sshll.u32 %s191_s24, 3 }
  0x12   : > { %s193_s28 = scalar_lea.vmem %s477_s0, %s312_s25  ;;  %s201_s5 = scalar_lea.vmem %s480_s3, %s314_s29 }
  0x13   : > { %v202_v4 = vld [vmem:[%s193_s28] sm:$0xf] }
  0x14   : > { %v203_v5 = vunpack.c.l.bf16 %v202_v4 }
  0x18   : > { %214 = vperm.xlu0 %358, %v211_v2  }
  0x82   : > { %v208_v3 = vpop.permute.xlu0 %207 }
  0x83   : > { %v210_v6 = vmul.f32 %v208_v3, %v203_v5 }
  0x8a   : > { %v215_v7 = vpop.permute.xlu0 %214 }
  0x8b   : > { %v217_v8 = vadd.f32 %v215_v7, %v210_v6 }
  0x8d   : > { %v218_v9 = vmax.f32 %v217_v8, 0.0 }
  0x8f   : > { %219 = vst [vmem:[%s201_s5] sm:$0xff] %v218_v9 }
  0x90 PF: > { %s13_s16 = sadd.s32 1, %s397_s16   ;;  %s481_s12 = smov %s389_s14 }
  0x91   : > { %p10_p7 = scmp.ge.s32.totalorder %s13_s16, 6   ;;  %s482_s13 = smov %s393_s15 }
  0x92   : > { %s483_s14 = smov %s486_s17  ;;  %s484_s15 = smov %s490_s18 }
  0x93   :  { %12 = sbr.rel (!%p10_p7) target bundleno = 3 (0x3), region = 62 }

// kernel: basic_conv.2
= control target key start
LH: loop header
LB: loop body
LE: loop exit
PB: predicated region body
PF: predicated region fallthrough
CT: control target
= control target key end

     0   :  { %s902_s15 = smov 0   ;;  %s904_s16 = smov 0   ;;  %s1015_s0 = inlined_call_operand.vmem [shape: bf16[2,2,160,12], index: 0, kind: input, shape index: {}]   ;;  %s1016_s1 = inlined_call_operand.vmem [shape: bf16[3,8,12], index: 1, kind: input, shape index: {}]   ;;  %s1017_s2 = inlined_call_operand.vmem [shape: bf16[2,8,256], index: 2, kind: output, shape index: {0}]   ;;  %s1018_s3 = inlined_call_operand.vmem [shape: f32[2,2,8,1], index: 3, kind: output, shape index: {1}]   ;;  %s1019_s4 = inlined_call_operand.vmem [shape: f32[2,2,8,1], index: 4, kind: output, shape index: {2}]  }
   0x1   :  { %s906_s17 = smov 0   ;;  %s908_s18 = smov 0  }
   0x2   :  { %s910_s19 = smov 0  }
   0x3 LB: > { %s24_s20 = sadd.s32 1, %s867_s17  ;;  %s27_s21 = sadd.s32 1, %s871_s18  ;;  %s875_s19 = sphi %s910_s19, %s15_s19   ;;  %s871_s18 = sphi %s908_s18, %s1023_s18   ;;  %s867_s17 = sphi %s906_s17, %s1022_s17   ;;  %s863_s16 = sphi %s904_s16, %s1021_s16   ;;  %s859_s15 = sphi %s902_s15, %s1020_s15  }
   0x4   : > { %p25_p0 = scmp.ge.s32.totalorder %s24_s20, 2  ;;  %p695_p1 = scmp.ge.s32.totalorder %s875_s19, 1 }
   0x5   : > { %p191_p2 = scmp.lt.s32.totalorder %s875_s19, 5 }
   0x6   : > { %s1025_s20 = smov (%p25_p0, %s24_s20), 0  ;;  %s1027_s21 = smov (!%p25_p0, %s27_s21), %s871_s18 }
   0x7   : > { %p192_p3 = pnand %p695_p1, %p191_p2  ;;  %p29_p4 = scmp.ge.s32.totalorder %s1027_s21, 2 }
   0x8   : > { %p240_p5 = scmp.lt.s32.totalorder (!%p192_p3), %s863_s16, 1  ;;  %p242_p6 = scmp.lt.s32.totalorder (!%p192_p3), %s859_s15, 1 }
   0x9   : > { %s1029_s21 = smov (%p29_p4, %s1027_s21), 0  ;;  %195 = sbr.rel (%p192_p3) target bundleno = 346 (0x15a), region = 28 }
   0xe   : > { %s1031_s16 = smov (!%p240_p5, %s863_s16), 1  ;;  %s1033_s15 = smov (!%p242_p6, %s859_s15), 1  ;;  %vm334_vm0 = vcmask 97280   ;;  %v703_v34 = vld [vmem:[%s1016_s1 + $0x4] sm:$0xf]  ;;  %vm500_vm1 = vcmask 7168  }
   0xf   : > { %s796_s22 = smul.u32 40, %s1031_s16  ;;  %v273_v35 = vld [vmem:[%s1016_s1] sm:$0xf]  ;;  %v742_v36 = vld [vmem:[%s1016_s1 + $0x8] sm:$0xf]  ;;  %s697_s9 = sshll.u32 %s1031_s16, 1 }
  0x10   : > { %s795_s23 = smul.u32 20, %s1033_s15  ;;  %s254_s10 = sadd.s32 %s697_s9, %s1033_s15 }
  0x11   : > { %s698_s11 = sshll.u32 %s254_s10, 2 }
  0x12   : > { %s246_s24 = sadd.s32 %s796_s22, %s795_s23  ;;  %s256_s14 = scalar_lea.vmem %s1017_s2, %s698_s11 }
  0x13   : > { %s696_s25 = sshll.u32 %s246_s24, 2  ;;  %s700_s22 = sshll.u32 %s254_s10, 3 }
  0x14   : > { %s941_s28 = scalar_lea.vmem %s1015_s0, %s696_s25  ;;  %s264_s15 = scalar_lea.vmem %s1018_s3, %s700_s22 }
  0x15   : > { %v786_v0 = vld [vmem:[%s941_s28 + $0x40] sm:$0xff]  ;;  %v785_v1 = vld [vmem:[%s941_s28 + $0x38] sm:$0xff]  ;;  %v794_v2 = vld [vmem:[%s941_s28 + $0x48] sm:$0xff]  ;;  %s272_s26 = scalar_lea.vmem %s1019_s4, %s700_s22 }
  0x16   : > { %v360_v3 = vsel %vm334_vm0, %v786_v0, 0  ;;  %v357_v4 = vsel %vm334_vm0, %v785_v1, 0  ;;  %v482_v5 = vsel %vm334_vm0, %v794_v2, 0  ;;  %v784_v6 = vld [vmem:[%s941_s28 + $0x30] sm:$0xff]  ;;  %v793_v7 = vld [vmem:[%s941_s28 + $0x40] sm:$0xff]  ;;  %v783_v10 = vld [vmem:[%s941_s28 + $0x28] sm:$0xff] }
  0x17   : > { %362 = vmatpush.bf16.xpose.msra.mxu0 %v360_v3  ;;  %386 = vmatpush.bf16.xpose.msra.mxu1 %v357_v4  ;;  %v354_v8 = vsel %vm334_vm0, %v784_v6, 0  ;;  %v479_v9 = vsel %vm334_vm0, %v793_v7, 0  ;;  %v792_v11 = vld [vmem:[%s941_s28 + $0x38] sm:$0xff]  ;;  %v351_v12 = vsel %vm334_vm0, %v783_v10, 0  ;;  %v782_v14 = vld [vmem:[%s941_s28 + $0x20] sm:$0xff]  ;;  %v791_v15 = vld [vmem:[%s941_s28 + $0x30] sm:$0xff] }
  0x18   : > { %484 = vmatpush.bf16.xpose.msra.mxu2 %v482_v5  ;;  %v476_v13 = vsel %vm334_vm0, %v792_v11, 0  ;;  %v348_v16 = vsel %vm334_vm0, %v782_v14, 0  ;;  %v473_v17 = vsel %vm334_vm0, %v791_v15, 0  ;;  %v781_v18 = vld [vmem:[%s941_s28 + $0x18] sm:$0xff]  ;;  %v790_v19 = vld [vmem:[%s941_s28 + $0x28] sm:$0xff]  ;;  %v780_v22 = vld [vmem:[%s941_s28 + $0x10] sm:$0xff] }
  0x19   : > { %v345_v20 = vsel %vm334_vm0, %v781_v18, 0  ;;  %v470_v21 = vsel %vm334_vm0, %v790_v19, 0  ;;  %v789_v23 = vld [vmem:[%s941_s28 + $0x20] sm:$0xff]  ;;  %v342_v24 = vsel %vm334_vm0, %v780_v22, 0  ;;  %v779_v26 = vld [vmem:[%s941_s28 + $0x8] sm:$0xff]  ;;  %v788_v27 = vld [vmem:[%s941_s28 + $0x18] sm:$0xff] }
  0x1a   : > { %v467_v25 = vsel %vm334_vm0, %v789_v23, 0  ;;  %v339_v28 = vsel %vm334_vm0, %v779_v26, 0  ;;  %v464_v29 = vsel %vm334_vm0, %v788_v27, 0  ;;  %v778_v30 = vld [vmem:[%s941_s28] sm:$0xff]  ;;  %v787_v31 = vld [vmem:[%s941_s28 + $0x10] sm:$0xff] }
  0x1b   : > { %v384_v32 = vsel %vm334_vm0, %v778_v30, 0  ;;  %v461_v33 = vsel %vm334_vm0, %v787_v31, 0 }
  0x1f   : > { %363 = vmatpush.bf16.xpose.msra.mxu0 %v357_v4  ;;  %387 = vmatpush.bf16.xpose.msra.mxu1 %v354_v8 }
  0x20   : > { %485 = vmatpush.bf16.xpose.msra.mxu2 %v479_v9 }
  0x27   : > { %364 = vmatpush.bf16.xpose.msra.mxu0 %v354_v8  ;;  %388 = vmatpush.bf16.xpose.msra.mxu1 %v351_v12 }
  0x28   : > { %486 = vmatpush.bf16.xpose.msra.mxu2 %v476_v13 }
  0x2f   : > { %365 = vmatpush.bf16.xpose.msra.mxu0 %v351_v12  ;;  %389 = vmatpush.bf16.xpose.msra.mxu1 %v348_v16 }
  0x30   : > { %487 = vmatpush.bf16.xpose.msra.mxu2 %v473_v17 }
  0x37   : > { %366 = vmatpush.bf16.xpose.msra.mxu0 %v348_v16  ;;  %390 = vmatpush.bf16.xpose.msra.mxu1 %v345_v20 }
  0x38   : > { %488 = vmatpush.bf16.xpose.msra.mxu2 %v470_v21 }
  0x3f   : > { %367 = vmatpush.bf16.xpose.msra.mxu0 %v345_v20  ;;  %391 = vmatpush.bf16.xpose.msra.mxu1 %v342_v24 }
  0x40   : > { %489 = vmatpush.bf16.xpose.msra.mxu2 %v467_v25 }
  0x47   : > { %368 = vmatpush.bf16.xpose.msra.mxu0 %v342_v24  ;;  %392 = vmatpush.bf16.xpose.msra.mxu1 %v339_v28 }
  0x48   : > { %490 = vmatpush.bf16.xpose.msra.mxu2 %v464_v29 }
  0x4f   : > { %369 = vmatpush.bf16.xpose.msra.mxu0 %v339_v28  ;;  %393 = vmatpush.bf16.xpose.msra.mxu1 %v384_v32 }
  0x50   : > { %491 = vmatpush.bf16.xpose.msra.mxu2 %v461_v33 }
  0x56   : > { %736 = vmatmul.msk.bf16.vlgmr.msra.gmra.mxu0 %vm334_vm0, %v703_v34  ;;  %741 = vmatmul.msk.bf16.vlgmr.msra.gmra.mxu1 %vm334_vm0, %v273_v35 }
  0x57   : > { %775 = vmatmul.msk.bf16.vlgmr.msra.gmra.mxu2 %vm334_vm0, %v742_v36 }
  0xd3   : > { %v371_v37 = vpop.f32.mrf.mxu0  ;;  %v395_v38 = vpop.f32.mrf.mxu1 }
  0xd4   : > { %v396_v39 = vadd.f32 %v395_v38, %v371_v37 }
  0xda   : > { %v493_v40 = vpop.f32.mrf.mxu2 }
  0xdb   : > { %v497_v41 = vadd.f32 %v493_v40, %v396_v39  ;;  %v373_v42 = vpop.f32.mrf.mxu0  ;;  %v397_v43 = vpop.f32.mrf.mxu1 }
  0xdd   : > { %v506_v44 = vpack.c.bf16 %v497_v41, %v497_v41  ;;  %498 = vadd.xlane.f32.xlu0 %v497_v41  ;;  %v502_v46 = vmul.f32 %v497_v41, %v497_v41 }
  0xdf   : > { %507 = vst [vmem:[%s256_s14] sm:$0xf] %v506_v44 }
  0xe2   : > { %v495_v45 = vpop.f32.mrf.mxu2 }
  0xe5   : > { %503 = vadd.xlane.f32.xlu0 %v502_v46 }
 0x150   : > { %v499_v47 = vpop.xlane.xlu0 %498 }
 0x151   : > { %501 = vst.msk [vmem:[%s264_s15] sm:$0xff] %vm500_vm1, %v499_v47 }
 0x158   : > { %v504_v48 = vpop.xlane.xlu0 %503 }
 0x159   : > { %505 = vst.msk [vmem:[%s272_s26] sm:$0xff] %vm500_vm1, %v504_v48 }
 0x15a PF: > { %s15_s19 = sadd.s32 1, %s875_s19   ;;  %s1020_s15 = smov %s867_s17 }
 0x15b   : > { %p12_p7 = scmp.ge.s32.totalorder %s15_s19, 6   ;;  %s1021_s16 = smov %s871_s18 }
 0x15c   : > { %s1022_s17 = smov %s1025_s20  ;;  %s1023_s18 = smov %s1029_s21 }
 0x15d   :  { %14 = sbr.rel (!%p12_p7) target bundleno = 3 (0x3), region = 84 }

</bundles_post_ra>
